<compile_context>
chip_gen: v6e
topology: v6e:2x2x1
jax: 0.10.0
libtpu: 0.0.40
codegen_flags: <defaults>
</compile_context>

<pallas_src>
import math

import jax
import jax.numpy as jnp
from jax.experimental import pallas as pl
from jax.experimental.pallas import tpu as pltpu  # noqa: F401  (imported per spec)

# Model / problem sizes (small, consistent with the module's forward)
SEQ = 8                 # L  (query length == key/value length)
BATCH = 2               # N
EMBED = 32              # embed_dim
HEADS = 4               # num_heads
HEAD_DIM = EMBED // HEADS
HIDDEN = 2 * EMBED      # ffn hidden
OUT = 16                # output_dim

M = SEQ * BATCH         # 16  rows of the fused slab, ordered (l, n)
HM = HEADS * M          # 64  rows of the head-packed slab, ordered (h, l, n)
QKV = 3 * EMBED         # 96  fused in-projection lanes (per-head [q|k|v] grouping)


def decoder_kernel(src_ref, fus_ref, wqkv_ref, wfm_ref, b_ref, out_ref):
    # --- fused QKV in-projection: ONE (16,64) @ (64,96) push ---
    x = jnp.concatenate([src_ref[...], fus_ref[...]], axis=1)          # (M, 2E)
    qkv = jnp.dot(x, wqkv_ref[...],
                  preferred_element_type=jnp.float32) + b_ref[0:1, :]  # (M, 96)

    # --- pack heads once: rows become (h, l, n), lanes stay [q|k|v] per head ---
    packed = jnp.concatenate(
        [qkv[:, h * 3 * HEAD_DIM:(h + 1) * 3 * HEAD_DIM] for h in range(HEADS)],
        axis=0)                                                        # (HM, 24)
    qh = packed[:, 0:HEAD_DIM]                 # already scaled by 1/sqrt(hd) via weights
    kh = packed[:, HEAD_DIM:2 * HEAD_DIM]
    vh = packed[:, 2 * HEAD_DIM:3 * HEAD_DIM]

    # --- one masked score matmul over all (head, batch) groups ---
    # Contracting RHS dim 1 (== trans_b) so the MXU consumes kh without a transpose.
    scores = jax.lax.dot_general(qh, kh, (((1,), (1,)), ((), ())),
                                 preferred_element_type=jnp.float32)   # (HM, HM)
    scores = scores + wfm_ref[EMBED + HIDDEN:EMBED + HIDDEN + HM, :]   # static mask

    # --- stable softmax; normalize the (HM, hd) PV output with approx reciprocal ---
    scores = scores - jnp.max(scores, axis=-1, keepdims=True)
    p = jnp.exp(scores)
    inv_l = pl.reciprocal(jnp.sum(p, axis=-1, keepdims=True), approx=True)   # (HM, 1)
    ctx = jnp.dot(p, vh, preferred_element_type=jnp.float32) * inv_l         # (HM, hd)

    # --- unpack heads back to lanes: (M, E) ---
    attn = jnp.concatenate([ctx[h * M:(h + 1) * M, :] for h in range(HEADS)], axis=1)

    # --- folded (attention out-proj @ FFN-1) -> LeakyReLU -> folded (FFN-2 @ out-proj) ---
    h1 = jnp.dot(attn, wfm_ref[0:EMBED, :],
                 preferred_element_type=jnp.float32) + b_ref[1:2, 0:HIDDEN]  # (M, 64)
    h1 = jnp.where(h1 > 0, h1, 0.01 * h1)                                    # LeakyReLU
    out_ref[...] = (jnp.dot(h1, wfm_ref[EMBED:EMBED + HIDDEN, 0:OUT],
                            preferred_element_type=jnp.float32)
                    + b_ref[2:3, 0:OUT])                                     # (M, OUT)


def prepare_params(params):
    """One-time repack of natural parameters into the kernel's fused operand slabs."""
    scale = 1.0 / math.sqrt(HEAD_DIM)

    def by_head(w):                      # (E, E) -> (E, H, hd): columns grouped per head
        return w.reshape(EMBED, HEADS, HEAD_DIM)

    zero = jnp.zeros((EMBED, HEADS, HEAD_DIM), jnp.float32)
    # rows 0:E multiply src (q, v); rows E:2E multiply fus (k); lanes per head: [q|k|v]
    top = jnp.stack([by_head(params["wq"]) * scale, zero, by_head(params["wv"])], axis=2)
    bot = jnp.stack([zero, by_head(params["wk"]), zero], axis=2)
    w_qkv = jnp.concatenate([top.reshape(EMBED, QKV),
                             bot.reshape(EMBED, QKV)], axis=0)               # (64, 96)
    b_qkv = jnp.stack([params["bq"].reshape(HEADS, HEAD_DIM) * scale,
                       params["bk"].reshape(HEADS, HEAD_DIM),
                       params["bv"].reshape(HEADS, HEAD_DIM)],
                      axis=1).reshape(1, QKV)                                # (1, 96)

    # Fold attention out-proj into FFN layer 1, and FFN layer 2 into the output proj.
    w_ow1 = params["wo"] @ params["w1"]                                      # (32, 64)
    b_ow1 = params["bo"] @ params["w1"] + params["b1"]                       # (1, 64)
    w_2out = params["w2"] @ params["wout"]                                   # (64, 16)
    b_2out = params["b2"] @ params["wout"] + params["bout"]                  # (1, 16)

    # Static additive attention mask over head-packed rows (h, l, n):
    # valid iff same head and same batch; every row has SEQ valid entries.
    idx = jnp.arange(HM)
    valid = ((idx[:, None] // M) == (idx[None, :] // M)) & \
            ((idx[:, None] % BATCH) == (idx[None, :] % BATCH))
    mask = jnp.where(valid, 0.0, -1e30).astype(jnp.float32)                  # (64, 64)

    # Weight+mask slab (row-concatenated; every kernel slice is 8-row / lane-0 aligned):
    #   rows   0: 32  -> W_ow1  (32, 64)
    #   rows  32: 96  -> W_2out (64, 16), lane-padded to 64
    #   rows  96:160  -> mask   (64, 64)
    w_fm = jnp.concatenate([w_ow1,
                            jnp.pad(w_2out, ((0, 0), (0, HIDDEN - OUT))),
                            mask], axis=0)                                   # (160, 64)

    # Bias slab: row 0 = b_qkv, row 1 = b_ow1 (padded), row 2 = b_2out (padded).
    b_all = jnp.concatenate([b_qkv,
                             jnp.pad(b_ow1, ((0, 0), (0, QKV - HIDDEN))),
                             jnp.pad(b_2out, ((0, 0), (0, QKV - OUT)))],
                            axis=0)                                          # (3, 96)

    return {"w_qkv": w_qkv, "w_fm": w_fm, "b_all": b_all}


def sequence_decoder(source_embed, fused_embed, packed):
    """source_embed, fused_embed: (L, N, E) float32. Returns (L, N, OUT)."""
    L, N, E = source_embed.shape
    # (L, N, E) -> (L*N, E) is a free reshape; rows ordered (l, n).
    src = source_embed.reshape(L * N, E)
    fus = fused_embed.reshape(L * N, E)

    out = pl.pallas_call(
        decoder_kernel,
        out_shape=jax.ShapeDtypeStruct((L * N, OUT), jnp.float32),
        # No grid: single invocation, all operands live whole in VMEM (~80 KB total).
    )(src, fus, packed["w_qkv"], packed["w_fm"], packed["b_all"])

    return out.reshape(L, N, OUT)


def reference(source_embed, fused_embed, params):
    """Pure-JAX reference with the natural (unfolded, unpacked) weights."""
    q = source_embed @ params["wq"] + params["bq"][0]
    k = fused_embed @ params["wk"] + params["bk"][0]
    v = source_embed @ params["wv"] + params["bv"][0]
    L, N, E = q.shape

    def split(x):  # (L, N, E) -> (N, HEADS, L, hd)
        return jnp.transpose(x.reshape(L, N, HEADS, HEAD_DIM), (1, 2, 0, 3))

    qh, kh, vh = split(q), split(k), split(v)
    scores = jnp.einsum("nhld,nhmd->nhlm", qh, kh) / math.sqrt(HEAD_DIM)
    p = jax.nn.softmax(scores, axis=-1)
    attn = jnp.einsum("nhlm,nhmd->nhld", p, vh)                     # (N, H, L, hd)
    attn = jnp.transpose(attn, (2, 0, 1, 3)).reshape(L, N, E)       # concat heads
    attn = attn @ params["wo"] + params["bo"][0]

    h1 = attn @ params["w1"] + params["b1"][0]
    h1 = jnp.where(h1 > 0, h1, 0.01 * h1)
    h2 = h1 @ params["w2"] + params["b2"][0]
    return h2 @ params["wout"] + params["bout"][0]


def init_params(key):
    names_shapes = [
        ("wq", (EMBED, EMBED)), ("wk", (EMBED, EMBED)), ("wv", (EMBED, EMBED)),
        ("bq", (1, EMBED)), ("bk", (1, EMBED)), ("bv", (1, EMBED)),
        ("wo", (EMBED, EMBED)), ("bo", (1, EMBED)),
        ("w1", (EMBED, HIDDEN)), ("b1", (1, HIDDEN)),
        ("w2", (HIDDEN, EMBED)), ("b2", (1, EMBED)),
        ("wout", (EMBED, OUT)), ("bout", (1, OUT)),
    ]
    keys = jax.random.split(key, len(names_shapes))
    return {name: (0.1 * jax.random.normal(k, shape, dtype=jnp.float32))
            for (name, shape), k in zip(names_shapes, keys)}


if __name__ == "__main__":
    key = jax.random.PRNGKey(0)
    k_src, k_fus, k_par = jax.random.split(key, 3)

    source_embed = jax.random.normal(k_src, (SEQ, BATCH, EMBED), dtype=jnp.float32)
    fused_embed = jax.random.normal(k_fus, (SEQ, BATCH, EMBED), dtype=jnp.float32)
    params = init_params(k_par)
    packed = prepare_params(params)        # one-time prep: fold, fuse, pack, build mask

    out = sequence_decoder(source_embed, fused_embed, packed)
    out = jax.block_until_ready(out)

    ref = reference(source_embed, fused_embed, params)
    assert out.shape == (SEQ, BATCH, OUT), out.shape
    max_err = float(jnp.max(jnp.abs(out - ref)))
    # Tolerance leaves headroom for the approx (EUP) reciprocal and weight folding drift.
    assert jnp.allclose(out, ref, atol=2e-3, rtol=2e-3), max_err

    print("KERNEL_OK")
</pallas_src>

<mosaic_0001>
module attributes {stable_mosaic.version = 11 : i64} {
  func.func @decoder_kernel(%arg0: memref<16x32xf32, #tpu.memory_space<vmem>>, %arg1: memref<16x32xf32, #tpu.memory_space<vmem>>, %arg2: memref<64x96xf32, #tpu.memory_space<vmem>>, %arg3: memref<160x64xf32, #tpu.memory_space<vmem>>, %arg4: memref<3x96xf32, #tpu.memory_space<vmem>>, %arg5: memref<16x16xf32, #tpu.memory_space<vmem>>) attributes {dimension_semantics = [], scalar_prefetch = 0 : i64, scratch_operands = 0 : i64, tpu.core_type = #tpu.core_type<tc>} {
    %c0 = arith.constant 0 : index
    %c0_0 = arith.constant 0 : index
    %0 = vector.load %arg0[%c0, %c0_0] : memref<16x32xf32, #tpu.memory_space<vmem>>, vector<16x32xf32>
    %c0_1 = arith.constant 0 : index
    %c0_2 = arith.constant 0 : index
    %1 = vector.load %arg1[%c0_1, %c0_2] : memref<16x32xf32, #tpu.memory_space<vmem>>, vector<16x32xf32>
    %2 = tpu.concatenate %0, %1 in 1 : vector<16x32xf32>, vector<16x32xf32> -> vector<16x64xf32>
    %c0_3 = arith.constant 0 : index
    %c0_4 = arith.constant 0 : index
    %3 = vector.load %arg2[%c0_3, %c0_4] : memref<64x96xf32, #tpu.memory_space<vmem>>, vector<64x96xf32>
    %cst = arith.constant dense<0.000000e+00> : vector<16x96xf32>
    %4 = tpu.matmul %2, %3, %cst {dimension_numbers = #tpu.dot_dimension_numbers<[1], [0], [0], [1], [0, 0, 1, 1], [], []>} : vector<16x64xf32>, vector<64x96xf32>, vector<16x96xf32> -> vector<16x96xf32>
    %c0_5 = arith.constant 0 : index
    %c0_6 = arith.constant 0 : index
    %5 = vector.load %arg4[%c0_5, %c0_6] : memref<3x96xf32, #tpu.memory_space<vmem>>, vector<1x96xf32>
    %6 = vector.broadcast %5 : vector<1x96xf32> to vector<16x96xf32>
    %7 = arith.addf %4, %6 : vector<16x96xf32>
    %8 = vector.extract_strided_slice %7 {offsets = [0, 0], sizes = [16, 24], strides = [1, 1]} : vector<16x96xf32> to vector<16x24xf32>
    %9 = vector.extract_strided_slice %7 {offsets = [0, 24], sizes = [16, 24], strides = [1, 1]} : vector<16x96xf32> to vector<16x24xf32>
    %10 = vector.extract_strided_slice %7 {offsets = [0, 48], sizes = [16, 24], strides = [1, 1]} : vector<16x96xf32> to vector<16x24xf32>
    %11 = vector.extract_strided_slice %7 {offsets = [0, 72], sizes = [16, 24], strides = [1, 1]} : vector<16x96xf32> to vector<16x24xf32>
    %12 = tpu.concatenate %8, %9, %10, %11 in 0 : vector<16x24xf32>, vector<16x24xf32>, vector<16x24xf32>, vector<16x24xf32> -> vector<64x24xf32>
    %13 = vector.extract_strided_slice %12 {offsets = [0, 0], sizes = [64, 8], strides = [1, 1]} : vector<64x24xf32> to vector<64x8xf32>
    %14 = vector.extract_strided_slice %12 {offsets = [0, 8], sizes = [64, 8], strides = [1, 1]} : vector<64x24xf32> to vector<64x8xf32>
    %15 = vector.extract_strided_slice %12 {offsets = [0, 16], sizes = [64, 8], strides = [1, 1]} : vector<64x24xf32> to vector<64x8xf32>
    %cst_7 = arith.constant dense<0.000000e+00> : vector<64x64xf32>
    %16 = tpu.matmul %13, %14, %cst_7 {dimension_numbers = #tpu.dot_dimension_numbers<[1], [1], [0], [0], [0, 0, 1, 0], [], []>} : vector<64x8xf32>, vector<64x8xf32>, vector<64x64xf32> -> vector<64x64xf32>
    %c96 = arith.constant 96 : index
    %c0_8 = arith.constant 0 : index
    %17 = vector.load %arg3[%c96, %c0_8] : memref<160x64xf32, #tpu.memory_space<vmem>>, vector<64x64xf32>
    %18 = arith.addf %16, %17 : vector<64x64xf32>
    %cst_9 = arith.constant dense<0xFF800000> : vector<64xf32>
    %19 = vector.multi_reduction <maximumf>, %18, %cst_9 [1] : vector<64x64xf32> to vector<64xf32>
    %20 = vector.shape_cast %19 : vector<64xf32> to vector<64x1xf32>
    %21 = vector.broadcast %20 : vector<64x1xf32> to vector<64x64xf32>
    %22 = arith.subf %18, %21 : vector<64x64xf32>
    %23 = math.exp %22 : vector<64x64xf32>
    %cst_10 = arith.constant dense<0.000000e+00> : vector<64xf32>
    %24 = vector.multi_reduction <add>, %23, %cst_10 [1] : vector<64x64xf32> to vector<64xf32>
    %25 = vector.shape_cast %24 : vector<64xf32> to vector<64x1xf32>
    %26 = tpu.reciprocal %25 {approx = true} : vector<64x1xf32> -> vector<64x1xf32>
    %cst_11 = arith.constant dense<0.000000e+00> : vector<64x8xf32>
    %27 = tpu.matmul %23, %15, %cst_11 {dimension_numbers = #tpu.dot_dimension_numbers<[1], [0], [0], [1], [0, 0, 1, 1], [], []>} : vector<64x64xf32>, vector<64x8xf32>, vector<64x8xf32> -> vector<64x8xf32>
    %28 = vector.broadcast %26 : vector<64x1xf32> to vector<64x8xf32>
    %29 = arith.mulf %27, %28 : vector<64x8xf32>
    %30 = vector.extract_strided_slice %29 {offsets = [0, 0], sizes = [16, 8], strides = [1, 1]} : vector<64x8xf32> to vector<16x8xf32>
    %31 = vector.extract_strided_slice %29 {offsets = [16, 0], sizes = [16, 8], strides = [1, 1]} : vector<64x8xf32> to vector<16x8xf32>
    %32 = vector.extract_strided_slice %29 {offsets = [32, 0], sizes = [16, 8], strides = [1, 1]} : vector<64x8xf32> to vector<16x8xf32>
    %33 = vector.extract_strided_slice %29 {offsets = [48, 0], sizes = [16, 8], strides = [1, 1]} : vector<64x8xf32> to vector<16x8xf32>
    %34 = tpu.concatenate %30, %31, %32, %33 in 1 : vector<16x8xf32>, vector<16x8xf32>, vector<16x8xf32>, vector<16x8xf32> -> vector<16x32xf32>
    %c0_12 = arith.constant 0 : index
    %c0_13 = arith.constant 0 : index
    %35 = vector.load %arg3[%c0_12, %c0_13] : memref<160x64xf32, #tpu.memory_space<vmem>>, vector<32x64xf32>
    %cst_14 = arith.constant dense<0.000000e+00> : vector<16x64xf32>
    %36 = tpu.matmul %34, %35, %cst_14 {dimension_numbers = #tpu.dot_dimension_numbers<[1], [0], [0], [1], [0, 0, 1, 1], [], []>} : vector<16x32xf32>, vector<32x64xf32>, vector<16x64xf32> -> vector<16x64xf32>
    %c1 = arith.constant 1 : index
    %c0_15 = arith.constant 0 : index
    %37 = vector.load %arg4[%c1, %c0_15] : memref<3x96xf32, #tpu.memory_space<vmem>>, vector<1x64xf32>
    %38 = vector.broadcast %37 : vector<1x64xf32> to vector<16x64xf32>
    %39 = arith.addf %36, %38 : vector<16x64xf32>
    %cst_16 = arith.constant 0.000000e+00 : f32
    %40 = vector.broadcast %cst_16 : f32 to vector<16x64xf32>
    %41 = arith.cmpf ogt, %39, %40 : vector<16x64xf32>
    %cst_17 = arith.constant 0.00999999977 : f32
    %42 = vector.broadcast %cst_17 : f32 to vector<16x64xf32>
    %43 = arith.mulf %42, %39 : vector<16x64xf32>
    %44 = arith.select %41, %39, %43 : vector<16x64xi1>, vector<16x64xf32>
    %c32 = arith.constant 32 : index
    %c0_18 = arith.constant 0 : index
    %45 = vector.load %arg3[%c32, %c0_18] : memref<160x64xf32, #tpu.memory_space<vmem>>, vector<64x16xf32>
    %cst_19 = arith.constant dense<0.000000e+00> : vector<16x16xf32>
    %46 = tpu.matmul %44, %45, %cst_19 {dimension_numbers = #tpu.dot_dimension_numbers<[1], [0], [0], [1], [0, 0, 1, 1], [], []>} : vector<16x64xf32>, vector<64x16xf32>, vector<16x16xf32> -> vector<16x16xf32>
    %c2 = arith.constant 2 : index
    %c0_20 = arith.constant 0 : index
    %47 = vector.load %arg4[%c2, %c0_20] : memref<3x96xf32, #tpu.memory_space<vmem>>, vector<1x16xf32>
    %48 = vector.broadcast %47 : vector<1x16xf32> to vector<16x16xf32>
    %49 = arith.addf %46, %48 : vector<16x16xf32>
    %c0_21 = arith.constant 0 : index
    %c0_22 = arith.constant 0 : index
    %50 = vector.load %arg5[%c0_21, %c0_22] : memref<16x16xf32, #tpu.memory_space<vmem>>, vector<16x16xf32>
    tpu.vector_store %arg5[%c0_21, %c0_22], %49 {strides = array<i32>} : memref<16x16xf32, #tpu.memory_space<vmem>>, vector<16x16xf32>,
    return
  }
}

</mosaic_0001>

<bundles_post_ra>
// kernel: tpu_custom_call.1
= control target key start
LH: loop header
LB: loop body
LE: loop exit
PB: predicated region body
PF: predicated region fallthrough
CT: control target
= control target key end

     0   :  { %s1049_s22 = smov 32   ;;  %s1305_s0 = inlined_call_operand.vmem [shape: f32[16,32], index: 0, kind: input, shape index: {}]   ;;  %s1306_s1 = inlined_call_operand.vmem [shape: f32[16,32], index: 1, kind: input, shape index: {}]   ;;  %s1307_s2 = inlined_call_operand.vmem [shape: f32[64,96], index: 2, kind: input, shape index: {}]   ;;  %s1308_s3 = inlined_call_operand.vmem [shape: f32[160,64], index: 3, kind: input, shape index: {}]   ;;  %s1309_s4 = inlined_call_operand.vmem [shape: f32[3,96], index: 4, kind: input, shape index: {}]   ;;  %s1310_s5 = inlined_call_operand.hbm [shape: f32[16,16], index: 5, kind: output, shape index: {}]  }
   0x1   :  { %v23_v0 = vld [vmem:[%s1306_s1] sm:$0xff]  ;;  %v43_v1 = vld [vmem:[%s1307_s2 + $0x38] sm:$0xff]  ;;  %v42_v2 = vld [vmem:[%s1307_s2 + $0x30] sm:$0xff] }
   0x2   :  { %27 = vrot.lane.b32.xlu0 %v23_v0, %s1049_s22  ;;  %879 = vmatprep.subr.mxu0 %v43_v1  ;;  %v24_v3 = vld [vmem:[%s1306_s1 + $0x8] sm:$0xff]  ;;  %v40_v5 = vld [vmem:[%s1307_s2 + $0x20] sm:$0xff] }
   0x3   :  { %880 = vmatpush3.msra.mxu0 %v43_v1  ;;  %v41_v4 = vld [vmem:[%s1307_s2 + $0x28] sm:$0xff] }
   0x4   :  { %881 = vmatprep.subr.mxu0 %v42_v2 }
   0x5   :  { %882 = vmatpush3.msra.mxu0 %v42_v2 }
   0x6   :  { %10 = vsyncpa [#allocation3], 0  ;;  %29 = vrot.lane.b32.xlu0 %v24_v3, %s1049_s22  ;;  %883 = vmatprep.subr.mxu0 %v41_v4  ;;  %v39_v6 = vld [vmem:[%s1307_s2 + $0x18] sm:$0xff]  ;;  %v38_v7 = vld [vmem:[%s1307_s2 + $0x10] sm:$0xff]  ;;  %vm33_vm0 = vcmask 261120   ;;  %vm49_vm1 = vcmask 523264  }
   0x7   :  { %884 = vmatpush3.msra.mxu0 %v41_v4  ;;  %v37_v8 = vld [vmem:[%s1307_s2 + $0x8] sm:$0xff]  ;;  %v36_v9 = vld [vmem:[%s1307_s2] sm:$0xff]  ;;  %vm169_vm2 = vcmask 64512   ;;  %s1050_s18 = smov 80   ;;  %s1052_s19 = smov 104   ;;  %v148_v46 = vld [vmem:[%s1308_s3 + $0x78] sm:$0xff] }
   0x8   :  { %885 = vmatprep.subr.mxu0 %v40_v5  ;;  %v21_v10 = vld [vmem:[%s1305_s0] sm:$0xff]  ;;  %v22_v13 = vld [vmem:[%s1305_s0 + $0x8] sm:$0xff]  ;;  %s1051_s0 = smov 56   ;;  %s1053_s20 = smov 120   ;;  %v147_v53 = vld [vmem:[%s1308_s3 + $0x70] sm:$0xff]  ;;  %vm577_vm3 = vcmask 195584  }
   0x9   :  { %886 = vmatpush3.msra.mxu0 %v40_v5  ;;  %v788_v16 = vld [vmem:[%s1309_s4] ss:$0 sm:$0xff]  ;;  %s1054_s21 = smov 112   ;;  %v146_v41 = vld [vmem:[%s1308_s3 + $0x68] sm:$0xff]  ;;  %v151_v62 = vld [vmem:[%s1308_s3 + $0x90] sm:$0xff]  ;;  %s1056_s25 = smov 16  }
   0xa   :  { %887 = vmatprep.subr.mxu0 %v39_v6  ;;  %v145_v43 = vld [vmem:[%s1308_s3 + $0x60] sm:$0xff]  ;;  %v150_v58 = vld [vmem:[%s1308_s3 + $0x88] sm:$0xff]  ;;  %v152_v2 = vld [vmem:[%s1308_s3 + $0x98] sm:$0xff]  ;;  %s1057_s28 = smov 24   ;;  %vm574_vm4 = vcmask 130048   ;;  %s1058_s14 = smov [#allocation2]  }
   0xb   :  { %888 = vmatpush3.msra.mxu0 %v39_v6  ;;  %v149_v55 = vld [vmem:[%s1308_s3 + $0x80] sm:$0xff]  ;;  %s777_s15 = sshll.u32 %s1058_s14, 4  ;;  %s778_s15 = int_to_ptr.vmem [resolvable:$true] %s777_s15 }
   0xc   :  { %889 = vmatprep.subr.mxu0 %v38_v7  ;;  %s1027_s16 = scalar_lea.vmem %s778_s15, 256  ;;  %p1032_p1 = scmp.lt.s32.totalorder %s778_s15, %s778_s15 }
   0xd   :  { %890 = vmatpush3.msra.mxu0 %v38_v7  ;;  %p1028_p0 = scmp.ne.s32.totalorder %s778_s15, %s1027_s16  ;;  %p1033_p2 = scmp.lt.s32.totalorder %s1027_s16, %s1027_s16 }
   0xe   :  { %891 = vmatprep.subr.mxu0 %v37_v8 }
   0xf   :  { %892 = vmatpush3.msra.mxu0 %v37_v8  ;;  %p1034_p3 = por %p1033_p2, %p1032_p1 }
  0x10   :  { %893 = vmatprep.subr.mxu0 %v36_v9 }
  0x11   :  { %894 = vmatpush3.msra.mxu0 %v36_v9  ;;  %p1035_p4 = pnand %p1034_p3, %p1028_p0 }
  0x74   :  { %v28_v11 = vpop.permute.xlu0 %27 }
  0x75   :  { %v34_v12 = vsel %vm33_vm0, %v21_v10, %v28_v11 }
  0x76   :  { %895 = vmatprep.mubr.msk.f32.mxu0 %vm49_vm1, %v34_v12 }
  0x78   :  { %v30_v14 = vpop.permute.xlu0 %29 }
  0x79   :  { %v35_v15 = vsel %vm33_vm0, %v22_v13, %v30_v14 }
  0x7a   :  { %896 = vmatmul.mubr.msk.f32.vlgmr.msra.gmra.mxu0 %vm49_vm1, %v35_v15 }
 0x13a   :  { %v897_v17 = vpop.f32.mrf.mxu0 }
 0x13b   :  { %v1133_v18 = vadd.f32 %v897_v17, %v788_v16 }
 0x13c   :  { %v122_v19 = vpop.f32.mrf.mxu0 }
 0x13d   :  { %v1135_v20 = vadd.f32 %v788_v16, %v122_v19  ;;  %139 = vrot.lane.b32.xlu0 %v1133_v18, %s1050_s18  ;;  %143 = vrot.lane.b32.xlu1 %v1133_v18, %s1051_s0 }
 0x13f   :  { %914 = vmatprep.mubr.msk.f32.mxu1 %vm169_vm2, %v1135_v20 }
 0x141   :  { %135 = vrot.lane.b32.xlu0 %v1133_v18, %s1052_s19  ;;  %141 = vrot.lane.b32.xlu1 %v1135_v20, %s1051_s0  ;;  %s1055_s0 = smov 8  }
 0x145   :  { %137 = vrot.lane.b32.xlu1 %v1135_v20, %s1050_s18 }
 0x149   :  { %133 = vrot.lane.b32.xlu1 %v1135_v20, %s1052_s19 }
 0x1af   :  { %v1145_v21 = vpop.permute.xlu1 %143  ;;  %v1148_v22 = vpop.permute.xlu0 %139 }
 0x1b0   :  { %167 = vrot.lane.b32.xlu0 %v1145_v21, %s1053_s20 }
 0x1b3   :  { %v1150_v23 = vpop.permute.xlu1 %141  ;;  %v136_v24 = vpop.permute.xlu0 %135 }
 0x1b4   :  { %163 = vrot.lane.b32.xlu0 %v1148_v22, %s1053_s20  ;;  %165 = vrot.lane.b32.xlu1 %v1150_v23, %s1053_s20 }
 0x1b7   :  { %v138_v25 = vpop.permute.xlu1 %137 }
 0x1b8   :  { %159 = vrot.lane.b32.xlu0 %v136_v24, %s1053_s20  ;;  %161 = vrot.lane.b32.xlu1 %v138_v25, %s1053_s20 }
 0x1bb   :  { %v134_v26 = vpop.permute.xlu1 %133 }
 0x1bc   :  { %155 = vrot.lane.b32.xlu0 %v1133_v18, %s1053_s20  ;;  %157 = vrot.lane.b32.xlu1 %v134_v26, %s1053_s20 }
 0x1c0   :  { %393 = vrot.lane.b32.xlu0 %v136_v24, %s1054_s21  ;;  %153 = vrot.lane.b32.xlu1 %v1135_v20, %s1053_s20 }
 0x1c4   :  { %399 = vrot.lane.b32.xlu0 %v1150_v23, %s1054_s21  ;;  %401 = vrot.lane.b32.xlu1 %v1145_v21, %s1054_s21 }
 0x1c8   :  { %397 = vrot.lane.b32.xlu1 %v1148_v22, %s1054_s21 }
 0x1cc   :  { %395 = vrot.lane.b32.xlu1 %v138_v25, %s1054_s21 }
 0x1d0   :  { %391 = vrot.lane.b32.xlu1 %v134_v26, %s1054_s21 }
 0x222   :  { %v168_v27 = vpop.permute.xlu0 %167 }
 0x223   :  { %898 = vmatprep.subr.msk.mxu1 %vm169_vm2, %v168_v27 }
 0x224   :  { %899 = vmatpush3.xpose.msk.msra.mxu1 %vm169_vm2, %v168_v27 }
 0x226   :  { %v164_v28 = vpop.permute.xlu0 %163  ;;  %v166_v29 = vpop.permute.xlu1 %165 }
 0x227   :  { %900 = vmatprep.subr.msk.mxu1 %vm169_vm2, %v166_v29 }
 0x228   :  { %901 = vmatpush3.xpose.msk.msra.mxu1 %vm169_vm2, %v166_v29 }
 0x229   :  { %902 = vmatprep.subr.msk.mxu1 %vm169_vm2, %v164_v28 }
 0x22a   :  { %v160_v30 = vpop.permute.xlu0 %159  ;;  %v162_v31 = vpop.permute.xlu1 %161 }
 0x22c   :  { %903 = vmatpush3.xpose.msk.msra.mxu1 %vm169_vm2, %v164_v28 }
 0x22d   :  { %904 = vmatprep.subr.msk.mxu1 %vm169_vm2, %v162_v31 }
 0x22e   :  { %v156_v32 = vpop.permute.xlu0 %155  ;;  %v158_v33 = vpop.permute.xlu1 %157 }
 0x230   :  { %905 = vmatpush3.xpose.msk.msra.mxu1 %vm169_vm2, %v162_v31 }
 0x231   :  { %906 = vmatprep.subr.msk.mxu1 %vm169_vm2, %v160_v30 }
 0x232   :  { %v394_v34 = vpop.permute.xlu0 %393  ;;  %v154_v35 = vpop.permute.xlu1 %153 }
 0x234   :  { %907 = vmatpush3.xpose.msk.msra.mxu1 %vm169_vm2, %v160_v30 }
 0x235   :  { %908 = vmatprep.subr.msk.mxu1 %vm169_vm2, %v158_v33 }
 0x236   :  { %v402_v36 = vpop.permute.xlu1 %401  ;;  %v400_v37 = vpop.permute.xlu0 %399 }
 0x237   :  { %926 = vmatprep.subr.mxu0 %v402_v36 }
 0x238   :  { %909 = vmatpush3.xpose.msk.msra.mxu1 %vm169_vm2, %v158_v33  ;;  %927 = vmatpush3.msra.mxu0 %v402_v36 }
 0x239   :  { %910 = vmatprep.subr.msk.mxu1 %vm169_vm2, %v156_v32  ;;  %928 = vmatprep.subr.mxu0 %v400_v37 }
 0x23a   :  { %929 = vmatpush3.msra.mxu0 %v400_v37  ;;  %v398_v38 = vpop.permute.xlu1 %397 }
 0x23b   :  { %930 = vmatprep.subr.mxu0 %v398_v38 }
 0x23c   :  { %911 = vmatpush3.xpose.msk.msra.mxu1 %vm169_vm2, %v156_v32  ;;  %931 = vmatpush3.msra.mxu0 %v398_v38 }
 0x23d   :  { %912 = vmatprep.subr.msk.mxu1 %vm169_vm2, %v154_v35 }
 0x23e   :  { %v396_v39 = vpop.permute.xlu1 %395 }
 0x23f   :  { %932 = vmatprep.subr.mxu0 %v396_v39 }
 0x240   :  { %913 = vmatpush3.xpose.msk.msra.mxu1 %vm169_vm2, %v154_v35  ;;  %933 = vmatpush3.msra.mxu0 %v396_v39 }
 0x241   :  { %934 = vmatprep.subr.mxu0 %v394_v34 }
 0x242   :  { %935 = vmatpush3.msra.mxu0 %v394_v34  ;;  %v392_v40 = vpop.permute.xlu1 %391 }
 0x243   :  { %915 = vmatmul.mubr.msk.f32.vlgmr.msra.gmra.mxu1 %vm169_vm2, %v1133_v18  ;;  %936 = vmatprep.subr.mxu0 %v392_v40 }
 0x244   :  { %917 = vmatprep.mubr.msk.f32.mxu1 %vm169_vm2, %v134_v26  ;;  %937 = vmatpush3.msra.mxu0 %v392_v40 }
 0x247   :  { %918 = vmatmul.mubr.msk.f32.gmra.mxu1 %vm169_vm2, %v136_v24 }
 0x248   :  { %920 = vmatprep.mubr.msk.f32.mxu1 %vm169_vm2, %v138_v25 }
 0x24b   :  { %921 = vmatmul.mubr.msk.f32.gmra.mxu1 %vm169_vm2, %v1148_v22 }
 0x24c   :  { %923 = vmatprep.mubr.msk.f32.mxu1 %vm169_vm2, %v1150_v23 }
 0x24f   :  { %924 = vmatmul.mubr.msk.f32.gmra.mxu1 %vm169_vm2, %v1145_v21 }
 0x303   :  { %v916_v42 = vpop.f32.mrf.mxu1 }
 0x304   :  { %v274_v44 = vadd.f32 %v916_v42, %v146_v41 }
 0x305   :  { %v268_v45 = vpop.f32.mrf.mxu1 }
 0x306   :  { %v269_v47 = vadd.f32 %v268_v45, %v145_v43  ;;  %v310_v48 = vsel %vm49_vm1, %v274_v44, -inf }
 0x307   :  { %311 = vmax.xlane.f32.xlu1 %v310_v48  ;;  %v919_v49 = vpop.f32.mrf.mxu1 }
 0x308   :  { %v284_v50 = vadd.f32 %v919_v49, %v148_v46  ;;  %v307_v51 = vsel %vm49_vm1, %v269_v47, -inf }
 0x309   :  { %v278_v52 = vpop.f32.mrf.mxu1  ;;  %308 = vmax.xlane.f32.xlu0 %v307_v51  ;;  %v583_v51 = vld [vmem:[%s1308_s3 + $0x18] sm:$0xff] }
 0x30a   :  { %v279_v56 = vadd.f32 %v278_v52, %v147_v53  ;;  %v316_v57 = vsel %vm49_vm1, %v284_v50, -inf }
 0x30b   :  { %v922_v54 = vpop.f32.mrf.mxu1 }
 0x30c   :  { %v294_v63 = vadd.f32 %v922_v54, %v150_v58  ;;  %v313_v1 = vsel %vm49_vm1, %v279_v56, -inf }
 0x30d   :  { %v288_v59 = vpop.f32.mrf.mxu1  ;;  %317 = vmax.xlane.f32.xlu0 %v316_v57 }
 0x30e   :  { %v289_v60 = vadd.f32 %v288_v59, %v149_v55  ;;  %v322_v7 = vsel %vm49_vm1, %v294_v63, -inf  ;;  %v581_v59 = vld [vmem:[%s1308_s3 + $0x8] sm:$0xff] }
 0x30f   :  { %v925_v61 = vpop.f32.mrf.mxu1 }
 0x310   :  { %v319_v0 = vsel %vm49_vm1, %v289_v60, -inf  ;;  %v304_v5 = vadd.f32 %v925_v61, %v152_v2 }
 0x311   :  { %v298_v3 = vpop.f32.mrf.mxu1  ;;  %320 = vmax.xlane.f32.xlu1 %v319_v0  ;;  %314 = vmax.xlane.f32.xlu0 %v313_v1  ;;  %v580_v1 = vld [vmem:[%s1308_s3] sm:$0xff] }
 0x312   :  { %v299_v4 = vadd.f32 %v298_v3, %v151_v62  ;;  %v328_v8 = vsel %vm49_vm1, %v304_v5, -inf }
 0x314   :  { %v325_v6 = vsel %vm49_vm1, %v299_v4, -inf }
 0x315   :  { %326 = vmax.xlane.f32.xlu1 %v325_v6  ;;  %323 = vmax.xlane.f32.xlu0 %v322_v7  ;;  %v683_v6 = vld [vmem:[%s1308_s3 + $0x58] sm:$0xff]  ;;  %v682_v7 = vld [vmem:[%s1308_s3 + $0x50] sm:$0xff] }
 0x316   :  { %965 = vmatprep.subr.mxu1 %v683_v6 }
 0x317   :  { %966 = vmatpush3.msra.mxu1 %v683_v6 }
 0x318   :  { %967 = vmatprep.subr.mxu1 %v682_v7 }
 0x319   :  { %329 = vmax.xlane.f32.xlu0 %v328_v8  ;;  %968 = vmatpush3.msra.mxu1 %v682_v7 }
 0x326   :  { %387 = vrot.lane.b32.xlu1 %v1135_v20, %s1054_s21 }
 0x32f   :  { %389 = vrot.lane.b32.xlu0 %v1133_v18, %s1054_s21 }
 0x390   :  { %v312_v9 = vpop.xlane.xlu1 %311 }
 0x391   :  { %v332_v12 = vsub.f32 %v274_v44, %v312_v9 }
 0x392   :  { %v309_v10 = vpop.xlane.xlu0 %308 }
 0x393   :  { %v331_v11 = vsub.f32 %v269_v47, %v309_v10  ;;  %v341_v16 = vmul.f32 1.442695, %v332_v12 }
 0x395   :  { %v339_v13 = vmul.f32 1.442695, %v331_v11  ;;  %v681_v11 = vld [vmem:[%s1308_s3 + $0x48] sm:$0xff] }
 0x396   :  { %v318_v14 = vpop.xlane.xlu0 %317  ;;  %969 = vmatprep.subr.mxu1 %v681_v11 }
 0x397   :  { %995 = vpow2.f32 %v339_v13  ;;  %v334_v15 = vsub.f32 %v284_v50, %v318_v14  ;;  %v680_v14 = vld [vmem:[%s1308_s3 + $0x40] sm:$0xff]  ;;  %970 = vmatpush3.msra.mxu1 %v681_v11 }
 0x398   :  { %971 = vmatprep.subr.mxu1 %v680_v14 }
 0x399   :  { %v345_v17 = vmul.f32 1.442695, %v334_v15  ;;  %972 = vmatpush3.msra.mxu1 %v680_v14 }
 0x39a   :  { %v321_v19 = vpop.xlane.xlu1 %320  ;;  %v315_v21 = vpop.xlane.xlu0 %314 }
 0x39b   :  { %997 = vpow2.f32 %v345_v17  ;;  %v335_v22 = vsub.f32 %v289_v60, %v321_v19  ;;  %v333_v23 = vsub.f32 %v279_v56, %v315_v21  ;;  %v582_v56 = vld [vmem:[%s1308_s3 + $0x10] sm:$0xff] }
 0x39c   :  { %999 = vpow2.f32 %v341_v16 }
 0x39d   :  { %v343_v20 = vmul.f32 1.442695, %v333_v23  ;;  %v347_v24 = vmul.f32 1.442695, %v335_v22 }
 0x39e   :  { %v327_v25 = vpop.xlane.xlu1 %326  ;;  %v324_v18 = vpop.xlane.xlu0 %323 }
 0x39f   :  { %v337_v26 = vsub.f32 %v299_v4, %v327_v25  ;;  %v336_v27 = vsub.f32 %v294_v63, %v324_v18  ;;  %1001 = vpow2.f32 %v343_v20 }
 0x3a0   :  { %1003 = vpow2.f32 %v347_v24 }
 0x3a1   :  { %v351_v28 = vmul.f32 1.442695, %v337_v26  ;;  %v349_v29 = vmul.f32 1.442695, %v336_v27 }
 0x3a2   :  { %v330_v30 = vpop.xlane.xlu0 %329  ;;  %v388_v36 = vpop.permute.xlu1 %387 }
 0x3a3   :  { %1005 = vpow2.f32 %v351_v28  ;;  %v338_v31 = vsub.f32 %v304_v5, %v330_v30 }
 0x3a4   :  { %v996_v32 = vpop.eup %995  ;;  %1007 = vpow2.f32 %v349_v29 }
 0x3a5   :  { %v353_v33 = vmul.f32 1.442695, %v338_v31  ;;  %942 = vmatprep.mubr.msk.f32.mxu0 %vm49_vm1, %v996_v32  ;;  %v355_v46 = vsel %vm49_vm1, %v996_v32, 0.0 }
 0x3a6   :  { %v390_v34 = vpop.permute.xlu0 %389 }
 0x3a7   :  { %938 = vmatprep.subr.mxu0 %v390_v34  ;;  %1009 = vpow2.f32 %v353_v33 }
 0x3a8   :  { %v998_v35 = vpop.eup %997  ;;  %939 = vmatpush3.msra.mxu0 %v390_v34 }
 0x3a9   :  { %940 = vmatprep.subr.mxu0 %v388_v36  ;;  %v364_v37 = vsel %vm49_vm1, %v998_v35, 0.0  ;;  %v1000_v38 = vpop.eup %999 }
 0x3aa   :  { %365 = vadd.xlane.f32.xlu1 %v364_v37  ;;  %941 = vmatpush3.msra.mxu0 %v388_v36  ;;  %v358_v50 = vsel %vm49_vm1, %v1000_v38, 0.0 }
 0x3ab   :  { %943 = vmatmul.mubr.msk.f32.vlgmr.msra.gmra.mxu0 %vm49_vm1, %v1000_v38  ;;  %954 = vmatprep.subr.mxu0 %v583_v51 }
 0x3ac   :  { %v1002_v39 = vpop.eup %1001  ;;  %955 = vmatpush3.msra.mxu0 %v583_v51 }
 0x3ad   :  { %945 = vmatprep.mubr.msk.f32.mxu0 %vm49_vm1, %v1002_v39  ;;  %v361_v40 = vsel %vm49_vm1, %v1002_v39, 0.0  ;;  %v1004_v41 = vpop.eup %1003  ;;  %956 = vmatprep.subr.mxu0 %v582_v56  ;;  %v679_v39 = vld [vmem:[%s1308_s3 + $0x38] sm:$0xff] }
 0x3ae   :  { %362 = vadd.xlane.f32.xlu0 %v361_v40  ;;  %v367_v48 = vsel %vm49_vm1, %v1004_v41, 0.0  ;;  %957 = vmatpush3.msra.mxu0 %v582_v56  ;;  %v678_v40 = vld [vmem:[%s1308_s3 + $0x30] sm:$0xff] }
 0x3af   :  { %946 = vmatmul.mubr.msk.f32.gmra.mxu0 %vm49_vm1, %v998_v35  ;;  %958 = vmatprep.subr.mxu0 %v581_v59 }
 0x3b0   :  { %v1006_v42 = vpop.eup %1005  ;;  %948 = vmatprep.mubr.msk.f32.mxu0 %vm49_vm1, %v1004_v41  ;;  %959 = vmatpush3.msra.mxu0 %v581_v59  ;;  %v677_v41 = vld [vmem:[%s1308_s3 + $0x28] sm:$0xff] }
 0x3b1   :  { %v1008_v43 = vpop.eup %1007  ;;  %v373_v44 = vsel %vm49_vm1, %v1006_v42, 0.0  ;;  %960 = vmatprep.subr.mxu0 %v580_v1  ;;  %973 = vmatprep.subr.mxu1 %v679_v39 }
 0x3b2   :  { %374 = vadd.xlane.f32.xlu1 %v373_v44  ;;  %v370_v45 = vsel %vm49_vm1, %v1008_v43, 0.0  ;;  %961 = vmatpush3.msra.mxu0 %v580_v1 }
 0x3b3   :  { %371 = vadd.xlane.f32.xlu0 %v370_v45  ;;  %949 = vmatmul.mubr.msk.f32.gmra.mxu0 %vm49_vm1, %v1008_v43  ;;  %v815_v43 = vld [vmem:[%s1309_s4 + $0x1] ss:$0 sm:$0xff] }
 0x3b4   :  { %951 = vmatprep.mubr.msk.f32.mxu0 %vm49_vm1, %v1006_v42  ;;  %v1010_v47 = vpop.eup %1009  ;;  %974 = vmatpush3.msra.mxu1 %v679_v39  ;;  %v676_v42 = vld [vmem:[%s1308_s3 + $0x20] sm:$0xff] }
 0x3b5   :  { %v376_v49 = vsel %vm49_vm1, %v1010_v47, 0.0  ;;  %975 = vmatprep.subr.mxu1 %v678_v40 }
 0x3b6   :  { %356 = vadd.xlane.f32.xlu1 %v355_v46  ;;  %976 = vmatpush3.msra.mxu1 %v678_v40 }
 0x3b7   :  { %368 = vadd.xlane.f32.xlu0 %v367_v48  ;;  %952 = vmatmul.mubr.msk.f32.gmra.mxu0 %vm49_vm1, %v1010_v47 }
 0x3b8   :  { %977 = vmatprep.subr.mxu1 %v677_v41 }
 0x3b9   :  { %978 = vmatpush3.msra.mxu1 %v677_v41 }
 0x3ba   :  { %979 = vmatprep.subr.mxu1 %v676_v42 }
 0x3bb   :  { %377 = vadd.xlane.f32.xlu0 %v376_v49  ;;  %980 = vmatpush3.msra.mxu1 %v676_v42 }
 0x3bf   :  { %359 = vadd.xlane.f32.xlu0 %v358_v50 }
 0x433   :  { %v366_v53 = vpop.xlane.xlu1 %365 }
 0x434   :  { %1011 = vrcp.f32 %v366_v53 }
 0x437   :  { %v363_v52 = vpop.xlane.xlu0 %362 }
 0x438   :  { %1013 = vrcp.f32 %v363_v52  ;;  %v818_v52 = vld [vmem:[%s1309_s4 + $0x2] ss:$0 sm:$0xff] }
 0x43b   :  { %v375_v57 = vpop.xlane.xlu1 %374 }
 0x43c   :  { %v372_v54 = vpop.xlane.xlu0 %371 }
 0x43d   :  { %1015 = vrcp.f32 %v372_v54 }
 0x43e   :  { %1017 = vrcp.f32 %v375_v57 }
 0x43f   :  { %v357_v23 = vpop.xlane.xlu1 %356 }
 0x440   :  { %v369_v55 = vpop.xlane.xlu0 %368 }
 0x441   :  { %1019 = vrcp.f32 %v369_v55  ;;  %v1012_v62 = vpop.eup %1011 }
 0x444   :  { %v378_v60 = vpop.xlane.xlu0 %377 }
 0x445   :  { %1021 = vrcp.f32 %v378_v60  ;;  %v1014_v2 = vpop.eup %1013 }
 0x446   :  { %1023 = vrcp.f32 %v357_v23 }
 0x448   :  { %v360_v20 = vpop.xlane.xlu0 %359 }
 0x449   :  { %1025 = vrcp.f32 %v360_v20 }
 0x44a   :  { %v1016_v8 = vpop.eup %1015 }
 0x44b   :  { %v1018_v13 = vpop.eup %1017 }
 0x44e   :  { %v1020_v15 = vpop.eup %1019 }
 0x452   :  { %v1022_v21 = vpop.eup %1021 }
 0x453   :  { %v1024_v26 = vpop.eup %1023 }
 0x456   :  { %v1026_v28 = vpop.eup %1025 }
 0x46b   :  { %v1250_v58 = vpop.f32.mrf.mxu0 }
 0x46c   :  { %v541_v32 = vmul.f32 %v1026_v28, %v1250_v58 }
 0x46d   :  { %v501_v61 = vpop.f32.mrf.mxu0 }
 0x46e   :  { %v540_v27 = vmul.f32 %v1024_v26, %v501_v61 }
 0x46f   :  { %v947_v63 = vpop.f32.mrf.mxu0 }
 0x470   :  { %v543_v0 = vmul.f32 %v1012_v62, %v947_v63 }
 0x471   :  { %v511_v3 = vpop.f32.mrf.mxu0 }
 0x472   :  { %v542_v4 = vmul.f32 %v1014_v2, %v511_v3  ;;  %552 = vrot.lane.b32.xlu0 %v543_v0, %s1055_s0 }
 0x473   :  { %v950_v5 = vpop.f32.mrf.mxu0 }
 0x474   :  { %550 = vrot.lane.b32.xlu1 %v542_v4, %s1055_s0  ;;  %v545_v10 = vmul.f32 %v1016_v8, %v950_v5 }
 0x475   :  { %v521_v9 = vpop.f32.mrf.mxu0 }
 0x476   :  { %v544_v17 = vmul.f32 %v1020_v15, %v521_v9 }
 0x477   :  { %v953_v12 = vpop.f32.mrf.mxu0 }
 0x478   :  { %560 = vrot.lane.b32.xlu1 %v545_v10, %s1056_s25  ;;  %v547_v22 = vmul.f32 %v1022_v21, %v953_v12 }
 0x479   :  { %v531_v16 = vpop.f32.mrf.mxu0 }
 0x47a   :  { %v546_v19 = vmul.f32 %v1018_v13, %v531_v16 }
 0x47c   :  { %566 = vrot.lane.b32.xlu0 %v546_v19, %s1057_s28  ;;  %558 = vrot.lane.b32.xlu1 %v544_v17, %s1056_s25 }
 0x480   :  { %568 = vrot.lane.b32.xlu1 %v547_v22, %s1057_s28 }
 0x4e4   :  { %v553_v25 = vpop.permute.xlu0 %552 }
 0x4e5   :  { %v573_v35 = vsel %vm169_vm2, %v541_v32, %v553_v25 }
 0x4e6   :  { %v551_v24 = vpop.permute.xlu1 %550 }
 0x4e7   :  { %v572_v29 = vsel %vm169_vm2, %v540_v27, %v551_v24 }
 0x4ea   :  { %v561_v18 = vpop.permute.xlu1 %560 }
 0x4eb   :  { %v576_v36 = vsel %vm574_vm4, %v573_v35, %v561_v18 }
 0x4ee   :  { %v559_v30 = vpop.permute.xlu1 %558  ;;  %v567_v31 = vpop.permute.xlu0 %566 }
 0x4ef   :  { %v575_v33 = vsel %vm574_vm4, %v572_v29, %v559_v30 }
 0x4f0   :  { %v578_v34 = vsel %vm577_vm3, %v575_v33, %v567_v31 }
 0x4f1   :  { %962 = vmatprep.mubr.msk.f32.mxu0 %vm33_vm0, %v578_v34 }
 0x4f2   :  { %v569_v37 = vpop.permute.xlu1 %568 }
 0x4f3   :  { %v579_v38 = vsel %vm577_vm3, %v576_v36, %v569_v37 }
 0x4f4   :  { %963 = vmatmul.mubr.msk.f32.vlgmr.msra.gmra.mxu0 %vm33_vm0, %v579_v38 }
 0x5b4   :  { %v964_v44 = vpop.f32.mrf.mxu0 }
 0x5b5   :  { %v667_v45 = vadd.f32 %v964_v44, %v815_v43 }
 0x5b6   :  { %v661_v46 = vpop.f32.mrf.mxu0 }
 0x5b7   :  { %v662_v47 = vadd.f32 %v815_v43, %v661_v46  ;;  %v673_v48 = vmul.f32 0.01, %v667_v45  ;;  %vm671_vm5 = vcmp.gt.f32.partialorder %v667_v45, 0.0 }
 0x5b9   :  { %vm670_vm6 = vcmp.gt.f32.partialorder %v662_v47, 0.0  ;;  %v672_v49 = vmul.f32 0.01, %v662_v47  ;;  %v675_v51 = vsel %vm671_vm5, %v667_v45, %v673_v48 }
 0x5bb   :  { %v674_v50 = vsel %vm670_vm6, %v662_v47, %v672_v49 }
 0x5bc   :  { %981 = vmatprep.mubr.msk.f32.mxu1 %vm49_vm1, %v674_v50 }
 0x5bd   :  { %982 = vmatmul.mubr.msk.f32.vlgmr.msra.gmra.mxu1 %vm49_vm1, %v675_v51 }
 0x67d   :  { %v983_v53 = vpop.f32.mrf.mxu1 }
 0x67e   :  { %v767_v54 = vadd.f32 %v983_v53, %v818_v52 }
 0x67f   :  { %v761_v55 = vpop.f32.mrf.mxu1 }
 0x680   :  { %771 = vst.msk [vmem:[#allocation2 + $0x8] sm:$0xff] %vm574_vm4, %v767_v54  ;;  %v762_v56 = vadd.f32 %v818_v52, %v761_v55 }
 0x682   :  { %770 = vst.msk [vmem:[#allocation2] sm:$0xff] %vm574_vm4, %v762_v56 }
 0x683   :  { %1038 = shalt.err (!%p1035_p4)
}
 0x684   :  { %s1059_s2 = smov 128  }
 0x685   :  { %783 = dma.vmem_to_hbm [thread:$0]  %s778_s15, 256, %s1310_s5, [#allocation3], %s1059_s2, %s1059_s2, %s1055_s0  }
 0x686   :  { %1047 = dma.done.wait [#allocation3], 256  }
 0x687   :  { %1048 = vsyncadd [#allocation3], 4294967040 }
 0x688   :  { %787 = vsyncpa [#allocation3], 1 }

</bundles_post_ra>
